<compile_context>
chip_gen: v7x
topology: tpu7x:2x2x1
jax: 0.10.0
libtpu: 0.0.40
codegen_flags: <defaults>
</compile_context>

<pallas_src>
import functools

import jax
import jax.numpy as jnp
from jax.experimental import pallas as pl
from jax.experimental.pallas import tpu as pltpu


def _round_up(x, m):
    return ((x + m - 1) // m) * m


def _init_unit_kernel(x_ref, w_ref, sb_ref, o_ref, *, wp):
    # x_ref : (Nb, Cin_p, L)   bf16; per-image zero-padded NCHW with the padded
    #                          spatial grid (Hp, Wp) flattened onto the lane
    #                          axis and zero-extended to L lanes.
    # w_ref : (9, Cout, Cin_p) bf16; tap t = dy*3+dx -> (Cout, Cin_p) matrix.
    # sb_ref: (Cout, 2)        f32 folded BN [scale, bias].
    # o_ref : (Nb, Cout, S)    f32, S = H*Wp (junk cols x in [W, Wp) are
    #                          sliced off by the wrapper).
    nb = x_ref.shape[0]
    cout, s_out = o_ref.shape[1], o_ref.shape[2]

    # Hoisted: scale/bias broadcast once, reused for every image of the block.
    scale = sb_ref[:, 0:1]                      # (Cout, 1) f32
    bias = sb_ref[:, 1:2]                       # (Cout, 1) f32

    for n in range(nb):                         # static unroll; Nb is small
        x_n = x_ref[n]                          # (Cin_p, L) bf16
        acc = jnp.zeros((cout, s_out), jnp.float32)
        for t in range(9):                      # 9 cheap MXU pushes, one acc
            dy, dx = divmod(t, 3)
            shift = dy * wp + dx                # uniform lane offset per tap
            rhs = x_n[:, shift:shift + s_out]   # (Cin_p, S) bf16
            acc = acc + jnp.dot(w_ref[t], rhs,
                                preferred_element_type=jnp.float32)
        y = acc * scale + bias                  # folded BN (inference), f32
        o_ref[n] = jnp.maximum(y, 0.0).astype(o_ref.dtype)


def _pick_nb(n, per_image_bytes, budget_bytes=4 << 20):
    """Largest divisor of n that fits the VMEM budget and keeps >=2 grid steps."""
    best = 1
    for nb in range(1, n + 1):
        if n % nb:
            continue
        if nb * per_image_bytes > budget_bytes:
            continue
        if n >= 2 and n // nb < 2:              # keep both v7x TCs busy
            continue
        best = nb
    return best


@jax.jit
def init_unit_small_forward(x_nchw, conv_w, bn_gamma, bn_beta,
                            bn_mean, bn_var, eps=1e-5):
    """x_nchw: (N, Cin, H, W) float32. conv_w: (Cout, Cin, 3, 3) float32."""
    N, Cin, H, W = x_nchw.shape
    Cout = conv_w.shape[0]
    Hp, Wp = H + 2, W + 2
    S = H * Wp                                   # per-image output lanes
    Cin_p = _round_up(Cin, 16)                   # bf16 sublane tile
    # tap (2,2) reads up to index 2*Wp + 2 + S - 1, i.e. Hp*Wp + 1
    L = _round_up(Hp * Wp + 2, 128)

    # --- glue (HBM side): zero-pad channels+spatial, flatten spatial, bf16 ---
    x_pad = jnp.pad(x_nchw, ((0, 0), (0, Cin_p - Cin), (1, 1), (1, 1)))
    x_flat = x_pad.reshape(N, Cin_p, Hp * Wp)
    x_flat = jnp.pad(x_flat, ((0, 0), (0, 0), (0, L - Hp * Wp)))
    x_flat = x_flat.astype(jnp.bfloat16)

    # Per-tap weight matrices: (Cout, Cin, 3, 3) -> (9, Cout, Cin_p), bf16.
    w_perm = jnp.transpose(conv_w, (2, 3, 0, 1))                  # (3,3,Cout,Cin)
    w_perm = jnp.pad(w_perm, ((0, 0), (0, 0), (0, 0), (0, Cin_p - Cin)))
    w_packed = w_perm.reshape(9, Cout, Cin_p).astype(jnp.bfloat16)

    # Fold BN (inference) into per-output-channel scale/bias, f32.
    inv_std = jax.lax.rsqrt(bn_var + eps)
    scale = bn_gamma * inv_std
    bias = bn_beta - bn_mean * scale
    sb = jnp.stack([scale, bias], axis=1)                         # (Cout, 2)

    per_image_bytes = Cin_p * L * 2 + Cout * S * 4
    Nb = _pick_nb(N, per_image_bytes)
    grid = (N // Nb,)

    # Explicit VMEM budget: double-buffered in/out blocks + weights + margin.
    block_bytes = 2 * Nb * per_image_bytes + 2 * (9 * Cout * Cin_p * 2
                                                  + Cout * 2 * 4)
    vmem_limit = int(min(64 << 20, max(4 << 20, 2 * block_bytes + (2 << 20))))

    out_flat = pl.pallas_call(
        functools.partial(_init_unit_kernel, wp=Wp),
        out_shape=jax.ShapeDtypeStruct((N, Cout, S), jnp.float32),
        grid_spec=pltpu.PrefetchScalarGridSpec(
            num_scalar_prefetch=0,
            grid=grid,
            in_specs=[
                pl.BlockSpec((Nb, Cin_p, L), lambda n: (n, 0, 0)),
                pl.BlockSpec((9, Cout, Cin_p), lambda n: (0, 0, 0)),
                pl.BlockSpec((Cout, 2), lambda n: (0, 0)),
            ],
            out_specs=pl.BlockSpec((Nb, Cout, S), lambda n: (n, 0, 0)),
        ),
        compiler_params=pltpu.CompilerParams(
            dimension_semantics=("parallel",),
            vmem_limit_bytes=vmem_limit),
    )(x_flat, w_packed, sb)

    # Drop the 2 junk (row-wraparound) columns per row: (N,Cout,H,Wp) -> NCHW.
    return out_flat.reshape(N, Cout, H, Wp)[:, :, :, :W]


def _reference(x_nchw, conv_w, bn_gamma, bn_beta, bn_mean, bn_var, eps=1e-5):
    y = jax.lax.conv_general_dilated(
        x_nchw, conv_w, window_strides=(1, 1), padding=((1, 1), (1, 1)),
        dimension_numbers=("NCHW", "OIHW", "NCHW"))
    inv_std = 1.0 / jnp.sqrt(bn_var + eps)
    scale = (bn_gamma * inv_std)[None, :, None, None]
    bias = (bn_beta - bn_mean * bn_gamma * inv_std)[None, :, None, None]
    return jnp.maximum(y * scale + bias, 0.0)


if __name__ == "__main__":
    key = jax.random.PRNGKey(0)
    k_x, k_w, k_g, k_b, k_m, k_v = jax.random.split(key, 6)

    N, Cin, H, W = 2, 4, 16, 16
    Cout = 8

    x = jax.random.normal(k_x, (N, Cin, H, W), dtype=jnp.float32)
    conv_w = jax.random.normal(k_w, (Cout, Cin, 3, 3), dtype=jnp.float32) * 0.1
    bn_gamma = 1.0 + 0.1 * jax.random.normal(k_g, (Cout,), dtype=jnp.float32)
    bn_beta = 0.1 * jax.random.normal(k_b, (Cout,), dtype=jnp.float32)
    bn_mean = 0.1 * jax.random.normal(k_m, (Cout,), dtype=jnp.float32)
    bn_var = jnp.abs(jax.random.normal(k_v, (Cout,), dtype=jnp.float32)) + 0.5

    out = init_unit_small_forward(x, conv_w, bn_gamma, bn_beta, bn_mean, bn_var)
    out = jax.block_until_ready(out)

    ref = _reference(x, conv_w, bn_gamma, bn_beta, bn_mean, bn_var)
    assert out.shape == (N, Cout, H, W)
    # bf16 matmul operands (f32 accumulate) -> loosened tolerance vs f32 ref.
    assert jnp.allclose(out, ref, atol=5e-2, rtol=5e-2), "mismatch vs reference"

    print("KERNEL_OK")
</pallas_src>

<mosaic_0001>
module attributes {stable_mosaic.version = 11 : i64} {
  func.func @_init_unit_kernel(%arg0: i32, %arg1: memref<1x16x384xbf16, #tpu.memory_space<vmem>>, %arg2: memref<9x8x16xbf16, #tpu.memory_space<vmem>>, %arg3: memref<8x2xf32, #tpu.memory_space<vmem>>, %arg4: memref<1x8x288xf32, #tpu.memory_space<vmem>>) attributes {dimension_semantics = [#tpu.dimension_semantics<parallel>], iteration_bounds = array<i64: 2>, scalar_prefetch = 0 : i64, scratch_operands = 0 : i64, tpu.core_type = #tpu.core_type<tc>, window_params = [{transform_indices = @transform_0, window_bounds = array<i64: 1, 16, 384>}, {pipeline_mode = #tpu.pipeline_mode<synchronous>, transform_indices = @transform_1, window_bounds = array<i64: 9, 8, 16>}, {pipeline_mode = #tpu.pipeline_mode<synchronous>, transform_indices = @transform_2, window_bounds = array<i64: 8, 2>}, {transform_indices = @transform_3, window_bounds = array<i64: 1, 8, 288>}]} {
    %c0 = arith.constant 0 : index
    %c0_0 = arith.constant 0 : index
    %0 = vector.load %arg3[%c0, %c0_0] : memref<8x2xf32, #tpu.memory_space<vmem>>, vector<8x1xf32>
    %c0_1 = arith.constant 0 : index
    %c1 = arith.constant 1 : index
    %1 = vector.load %arg3[%c0_1, %c1] : memref<8x2xf32, #tpu.memory_space<vmem>>, vector<8x1xf32>
    %c0_2 = arith.constant 0 : index
    %c0_3 = arith.constant 0 : index
    %c0_4 = arith.constant 0 : index
    %2 = vector.load %arg1[%c0_2, %c0_3, %c0_4] : memref<1x16x384xbf16, #tpu.memory_space<vmem>>, vector<1x16x384xbf16>
    %3 = vector.shape_cast %2 : vector<1x16x384xbf16> to vector<16x384xbf16>
    %cst = arith.constant 0.000000e+00 : f32
    %4 = vector.broadcast %cst : f32 to vector<8x288xf32>
    %5 = vector.extract_strided_slice %3 {offsets = [0, 0], sizes = [16, 288], strides = [1, 1]} : vector<16x384xbf16> to vector<16x288xbf16>
    %c0_5 = arith.constant 0 : index
    %c0_6 = arith.constant 0 : index
    %c0_7 = arith.constant 0 : index
    %6 = vector.load %arg2[%c0_5, %c0_6, %c0_7] : memref<9x8x16xbf16, #tpu.memory_space<vmem>>, vector<1x8x16xbf16>
    %7 = vector.shape_cast %6 : vector<1x8x16xbf16> to vector<8x16xbf16>
    %cst_8 = arith.constant dense<0.000000e+00> : vector<8x288xf32>
    %8 = tpu.matmul %7, %5, %cst_8 {dimension_numbers = #tpu.dot_dimension_numbers<[1], [0], [0], [1], [0, 0, 1, 1], [], []>} : vector<8x16xbf16>, vector<16x288xbf16>, vector<8x288xf32> -> vector<8x288xf32>
    %9 = arith.addf %4, %8 : vector<8x288xf32>
    %10 = vector.extract_strided_slice %3 {offsets = [0, 1], sizes = [16, 288], strides = [1, 1]} : vector<16x384xbf16> to vector<16x288xbf16>
    %c1_9 = arith.constant 1 : index
    %c0_10 = arith.constant 0 : index
    %c0_11 = arith.constant 0 : index
    %11 = vector.load %arg2[%c1_9, %c0_10, %c0_11] : memref<9x8x16xbf16, #tpu.memory_space<vmem>>, vector<1x8x16xbf16>
    %12 = vector.shape_cast %11 : vector<1x8x16xbf16> to vector<8x16xbf16>
    %cst_12 = arith.constant dense<0.000000e+00> : vector<8x288xf32>
    %13 = tpu.matmul %12, %10, %cst_12 {dimension_numbers = #tpu.dot_dimension_numbers<[1], [0], [0], [1], [0, 0, 1, 1], [], []>} : vector<8x16xbf16>, vector<16x288xbf16>, vector<8x288xf32> -> vector<8x288xf32>
    %14 = arith.addf %9, %13 : vector<8x288xf32>
    %15 = vector.extract_strided_slice %3 {offsets = [0, 2], sizes = [16, 288], strides = [1, 1]} : vector<16x384xbf16> to vector<16x288xbf16>
    %c2 = arith.constant 2 : index
    %c0_13 = arith.constant 0 : index
    %c0_14 = arith.constant 0 : index
    %16 = vector.load %arg2[%c2, %c0_13, %c0_14] : memref<9x8x16xbf16, #tpu.memory_space<vmem>>, vector<1x8x16xbf16>
    %17 = vector.shape_cast %16 : vector<1x8x16xbf16> to vector<8x16xbf16>
    %cst_15 = arith.constant dense<0.000000e+00> : vector<8x288xf32>
    %18 = tpu.matmul %17, %15, %cst_15 {dimension_numbers = #tpu.dot_dimension_numbers<[1], [0], [0], [1], [0, 0, 1, 1], [], []>} : vector<8x16xbf16>, vector<16x288xbf16>, vector<8x288xf32> -> vector<8x288xf32>
    %19 = arith.addf %14, %18 : vector<8x288xf32>
    %20 = vector.extract_strided_slice %3 {offsets = [0, 18], sizes = [16, 288], strides = [1, 1]} : vector<16x384xbf16> to vector<16x288xbf16>
    %c3 = arith.constant 3 : index
    %c0_16 = arith.constant 0 : index
    %c0_17 = arith.constant 0 : index
    %21 = vector.load %arg2[%c3, %c0_16, %c0_17] : memref<9x8x16xbf16, #tpu.memory_space<vmem>>, vector<1x8x16xbf16>
    %22 = vector.shape_cast %21 : vector<1x8x16xbf16> to vector<8x16xbf16>
    %cst_18 = arith.constant dense<0.000000e+00> : vector<8x288xf32>
    %23 = tpu.matmul %22, %20, %cst_18 {dimension_numbers = #tpu.dot_dimension_numbers<[1], [0], [0], [1], [0, 0, 1, 1], [], []>} : vector<8x16xbf16>, vector<16x288xbf16>, vector<8x288xf32> -> vector<8x288xf32>
    %24 = arith.addf %19, %23 : vector<8x288xf32>
    %25 = vector.extract_strided_slice %3 {offsets = [0, 19], sizes = [16, 288], strides = [1, 1]} : vector<16x384xbf16> to vector<16x288xbf16>
    %c4 = arith.constant 4 : index
    %c0_19 = arith.constant 0 : index
    %c0_20 = arith.constant 0 : index
    %26 = vector.load %arg2[%c4, %c0_19, %c0_20] : memref<9x8x16xbf16, #tpu.memory_space<vmem>>, vector<1x8x16xbf16>
    %27 = vector.shape_cast %26 : vector<1x8x16xbf16> to vector<8x16xbf16>
    %cst_21 = arith.constant dense<0.000000e+00> : vector<8x288xf32>
    %28 = tpu.matmul %27, %25, %cst_21 {dimension_numbers = #tpu.dot_dimension_numbers<[1], [0], [0], [1], [0, 0, 1, 1], [], []>} : vector<8x16xbf16>, vector<16x288xbf16>, vector<8x288xf32> -> vector<8x288xf32>
    %29 = arith.addf %24, %28 : vector<8x288xf32>
    %30 = vector.extract_strided_slice %3 {offsets = [0, 20], sizes = [16, 288], strides = [1, 1]} : vector<16x384xbf16> to vector<16x288xbf16>
    %c5 = arith.constant 5 : index
    %c0_22 = arith.constant 0 : index
    %c0_23 = arith.constant 0 : index
    %31 = vector.load %arg2[%c5, %c0_22, %c0_23] : memref<9x8x16xbf16, #tpu.memory_space<vmem>>, vector<1x8x16xbf16>
    %32 = vector.shape_cast %31 : vector<1x8x16xbf16> to vector<8x16xbf16>
    %cst_24 = arith.constant dense<0.000000e+00> : vector<8x288xf32>
    %33 = tpu.matmul %32, %30, %cst_24 {dimension_numbers = #tpu.dot_dimension_numbers<[1], [0], [0], [1], [0, 0, 1, 1], [], []>} : vector<8x16xbf16>, vector<16x288xbf16>, vector<8x288xf32> -> vector<8x288xf32>
    %34 = arith.addf %29, %33 : vector<8x288xf32>
    %35 = vector.extract_strided_slice %3 {offsets = [0, 36], sizes = [16, 288], strides = [1, 1]} : vector<16x384xbf16> to vector<16x288xbf16>
    %c6 = arith.constant 6 : index
    %c0_25 = arith.constant 0 : index
    %c0_26 = arith.constant 0 : index
    %36 = vector.load %arg2[%c6, %c0_25, %c0_26] : memref<9x8x16xbf16, #tpu.memory_space<vmem>>, vector<1x8x16xbf16>
    %37 = vector.shape_cast %36 : vector<1x8x16xbf16> to vector<8x16xbf16>
    %cst_27 = arith.constant dense<0.000000e+00> : vector<8x288xf32>
    %38 = tpu.matmul %37, %35, %cst_27 {dimension_numbers = #tpu.dot_dimension_numbers<[1], [0], [0], [1], [0, 0, 1, 1], [], []>} : vector<8x16xbf16>, vector<16x288xbf16>, vector<8x288xf32> -> vector<8x288xf32>
    %39 = arith.addf %34, %38 : vector<8x288xf32>
    %40 = vector.extract_strided_slice %3 {offsets = [0, 37], sizes = [16, 288], strides = [1, 1]} : vector<16x384xbf16> to vector<16x288xbf16>
    %c7 = arith.constant 7 : index
    %c0_28 = arith.constant 0 : index
    %c0_29 = arith.constant 0 : index
    %41 = vector.load %arg2[%c7, %c0_28, %c0_29] : memref<9x8x16xbf16, #tpu.memory_space<vmem>>, vector<1x8x16xbf16>
    %42 = vector.shape_cast %41 : vector<1x8x16xbf16> to vector<8x16xbf16>
    %cst_30 = arith.constant dense<0.000000e+00> : vector<8x288xf32>
    %43 = tpu.matmul %42, %40, %cst_30 {dimension_numbers = #tpu.dot_dimension_numbers<[1], [0], [0], [1], [0, 0, 1, 1], [], []>} : vector<8x16xbf16>, vector<16x288xbf16>, vector<8x288xf32> -> vector<8x288xf32>
    %44 = arith.addf %39, %43 : vector<8x288xf32>
    %45 = vector.extract_strided_slice %3 {offsets = [0, 38], sizes = [16, 288], strides = [1, 1]} : vector<16x384xbf16> to vector<16x288xbf16>
    %c8 = arith.constant 8 : index
    %c0_31 = arith.constant 0 : index
    %c0_32 = arith.constant 0 : index
    %46 = vector.load %arg2[%c8, %c0_31, %c0_32] : memref<9x8x16xbf16, #tpu.memory_space<vmem>>, vector<1x8x16xbf16>
    %47 = vector.shape_cast %46 : vector<1x8x16xbf16> to vector<8x16xbf16>
    %cst_33 = arith.constant dense<0.000000e+00> : vector<8x288xf32>
    %48 = tpu.matmul %47, %45, %cst_33 {dimension_numbers = #tpu.dot_dimension_numbers<[1], [0], [0], [1], [0, 0, 1, 1], [], []>} : vector<8x16xbf16>, vector<16x288xbf16>, vector<8x288xf32> -> vector<8x288xf32>
    %49 = arith.addf %44, %48 : vector<8x288xf32>
    %50 = vector.broadcast %0 : vector<8x1xf32> to vector<8x288xf32>
    %51 = arith.mulf %49, %50 : vector<8x288xf32>
    %52 = vector.broadcast %1 : vector<8x1xf32> to vector<8x288xf32>
    %53 = arith.addf %51, %52 : vector<8x288xf32>
    %cst_34 = arith.constant 0.000000e+00 : f32
    %54 = vector.broadcast %cst_34 : f32 to vector<8x288xf32>
    %55 = arith.maximumf %53, %54 : vector<8x288xf32>
    %c0_35 = arith.constant 0 : index
    %c0_36 = arith.constant 0 : index
    %c0_37 = arith.constant 0 : index
    %56 = vector.load %arg4[%c0_35, %c0_36, %c0_37] : memref<1x8x288xf32, #tpu.memory_space<vmem>>, vector<1x8x288xf32>
    %57 = vector.shape_cast %56 : vector<1x8x288xf32> to vector<8x288xf32>
    %58 = vector.shape_cast %55 : vector<8x288xf32> to vector<1x8x288xf32>
    tpu.vector_store %arg4[%c0_35, %c0_36, %c0_37], %58 {strides = array<i32>} : memref<1x8x288xf32, #tpu.memory_space<vmem>>, vector<1x8x288xf32>,
    return
  }
  func.func @transform_0(%arg0: i32) -> (i32, i32, i32) {
    %c0_i32 = arith.constant 0 : i32
    %c0_i32_0 = arith.constant 0 : i32
    %c0_i32_1 = arith.constant 0 : i32
    return %arg0, %c0_i32, %c0_i32_0 : i32, i32, i32
  }
  func.func @transform_1(%arg0: i32) -> (i32, i32, i32) {
    %c0_i32 = arith.constant 0 : i32
    %c0_i32_0 = arith.constant 0 : i32
    %c0_i32_1 = arith.constant 0 : i32
    %c0_i32_2 = arith.constant 0 : i32
    return %c0_i32, %c0_i32_0, %c0_i32_1 : i32, i32, i32
  }
  func.func @transform_2(%arg0: i32) -> (i32, i32) {
    %c0_i32 = arith.constant 0 : i32
    %c0_i32_0 = arith.constant 0 : i32
    %c0_i32_1 = arith.constant 0 : i32
    return %c0_i32, %c0_i32_0 : i32, i32
  }
  func.func @transform_3(%arg0: i32) -> (i32, i32, i32) {
    %c0_i32 = arith.constant 0 : i32
    %c0_i32_0 = arith.constant 0 : i32
    %c0_i32_1 = arith.constant 0 : i32
    return %arg0, %c0_i32, %c0_i32_0 : i32, i32, i32
  }
}

</mosaic_0001>

<bundles_post_ra>
// kernel: init_unit_small_forward.1
= control target key start
LH: loop header
LB: loop body
LE: loop exit
PB: predicated region body
PF: predicated region fallthrough
CT: control target
= control target key end

     0   :  { %s1403_s12 = smov 0   ;;  %s1524_s0 = inlined_call_operand.vmem [shape: bf16[2,16,384], index: 0, kind: input, shape index: {}]   ;;  %s1525_s1 = inlined_call_operand.vmem [shape: bf16[9,8,16], index: 1, kind: input, shape index: {}]   ;;  %s1526_s2 = inlined_call_operand.vmem [shape: f32[8,2], index: 2, kind: input, shape index: {}]   ;;  %s1527_s3 = inlined_call_operand.vmem [shape: f32[2,8,288], index: 3, kind: output, shape index: {}]  }
   0x1 LB: > { %s1161_s13 = sadd.s32 4294967295, %s1369_s12   ;;  %p1165_p0 = scmp.ge.s32.totalorder %s1369_s12, 1  ;;  %s1369_s12 = sphi %s1403_s12, %s13_s12  }
   0x2   : > { %p137_p1 = scmp.lt.s32.totalorder %s1369_s12, 3 }
   0x4   : > { %p138_p2 = pnand %p1165_p0, %p137_p1 }
   0x5   : > { %p161_p3 = scmp.lt.s32.totalorder (!%p138_p2), %s1161_s13, 1  ;;  %v1371_v0 = vmov (!%p138_p2), 0.0   ;;  %vm1372_vm0 = vmmov (!%p138_p2), 0   ;;  %v1373_v1 = vmov (!%p138_p2), 0   ;;  %s1374_s18 = smov (!%p138_p2), 127   ;;  %v172_v5 = vld [vmem:[%s1526_s2] sm:$0xff] (!%p138_p2) }
   0x6   : > { %141 = sbr.rel (%p138_p2) target bundleno = 458 (0x1ca), region = 32  ;;  %1217 = vmatprep.subr.bf16.mxu1 (!%p138_p2), %v1371_v0  ;;  %1219 = vmatprep.mubr.msk.bf16.mxu1 (!%p138_p2), %vm1372_vm0, %v1371_v0  ;;  %s1375_s19 = smov (!%p138_p2), 126   ;;  %v1382_v6 = vmov (!%p138_p2), 1   ;;  %vm199_vm1 = vcmask (!%p138_p2), 1039360   ;;  %v1168_v11 = vld [vmem:[%s1525_s1 + $0x4] sm:$0xf] (!%p138_p2) }
   0x7   : > { %241 = vmatprep.mubr.bf16.mxu0 (!%p138_p2), %v1373_v1  ;;  %1356 = vset.pattern.permute.xlu0 (!%p138_p2), %v1373_v1  ;;  %s1376_s20 = smov (!%p138_p2), 110   ;;  %s1377_s21 = smov (!%p138_p2), 109   ;;  %vm205_vm2 = vcmask (!%p138_p2), 130048   ;;  %vm385_vm3 = vcmask (!%p138_p2), 1031168   ;;  %v177_v17 = vld [vmem:[%s1525_s1] sm:$0xf] (!%p138_p2) }
   0x8   : > { %s1378_s22 = smov (!%p138_p2), 108   ;;  %s1379_s23 = smov (!%p138_p2), 92   ;;  %1357 = vset.pattern.permute.xlu1 (!%p138_p2), %v1382_v6  ;;  %vm486_vm4 = vcmask (!%p138_p2), 900096   ;;  %v1176_v23 = vld [vmem:[%s1525_s1 + $0x8] sm:$0xf] (!%p138_p2)  ;;  %vm587_vm5 = vcmask (!%p138_p2), 891904  }
   0x9   : > { %s1380_s24 = smov (!%p138_p2), 91   ;;  %s1381_s25 = smov (!%p138_p2), 90   ;;  %v1179_v29 = vld [vmem:[%s1525_s1 + $0xc] sm:$0xf] (!%p138_p2)  ;;  %vm688_vm6 = vcmask (!%p138_p2), 883712   ;;  %vm789_vm7 = vcmask (!%p138_p2), 752640  }
   0xa   : > { %v1182_v35 = vld [vmem:[%s1525_s1 + $0x10] sm:$0xf] (!%p138_p2)  ;;  %v1185_v41 = vld [vmem:[%s1525_s1 + $0x14] sm:$0xf] (!%p138_p2)  ;;  %vm890_vm8 = vcmask (!%p138_p2), 744448   ;;  %vm991_vm9 = vcmask (!%p138_p2), 736256  }
   0xb   : > { %v1188_v47 = vld [vmem:[%s1525_s1 + $0x18] sm:$0xf] (!%p138_p2)  ;;  %v1191_v53 = vld [vmem:[%s1525_s1 + $0x1c] sm:$0xf] (!%p138_p2)  ;;  %v1194_v55 = vld [vmem:[%s1525_s1 + $0x20] sm:$0xf] (!%p138_p2) }
   0xc   : > { %vm1104_vm10 = vcmask (!%p138_p2), 261120  }
   0xd   : > { %s1529_s13 = smov (!%p161_p3, %s1161_s13), 1 }
   0xe   : > { %s1335_s14 = smul.u32 24, %s1529_s13 }
  0x10   : > { %s165_s17 = scalar_lea.vmem %s1524_s0, %s1335_s14 }
  0x11   : > { %v1359_v2 = vld [vmem:[%s165_s17 + $0x4] ss:$12 sps:$4 sm:$0xff]   ;;  %v1361_v3 = vld [vmem:[%s165_s17] ss:$12 sps:$4 sm:$0xff]   ;;  %v1362_v4 = vld [vmem:[%s165_s17 + $0x8] ss:$12 sps:$4 sm:$0xff]  }
  0x12   : > { %195 = vrot.lane.b32.xlu0 %v1359_v2, %s1374_s18  ;;  %193 = vrot.lane.b32.xlu1 %v1361_v3, %s1374_s18 }
  0x16   : > { %197 = vrot.lane.b32.xlu0 %v1362_v4, %s1374_s18  ;;  %381 = vrot.lane.b32.xlu1 %v1359_v2, %s1375_s19 }
  0x1a   : > { %383 = vrot.lane.b32.xlu0 %v1362_v4, %s1375_s19  ;;  %379 = vrot.lane.b32.xlu1 %v1361_v3, %s1375_s19 }
  0x1e   : > { %482 = vrot.lane.b32.xlu0 %v1359_v2, %s1376_s20  ;;  %484 = vrot.lane.b32.xlu1 %v1362_v4, %s1376_s20 }
  0x22   : > { %480 = vrot.lane.b32.xlu0 %v1361_v3, %s1376_s20  ;;  %583 = vrot.lane.b32.xlu1 %v1359_v2, %s1377_s21 }
  0x26   : > { %585 = vrot.lane.b32.xlu0 %v1362_v4, %s1377_s21  ;;  %581 = vrot.lane.b32.xlu1 %v1361_v3, %s1377_s21 }
  0x2a   : > { %684 = vrot.lane.b32.xlu0 %v1359_v2, %s1378_s22  ;;  %686 = vrot.lane.b32.xlu1 %v1362_v4, %s1378_s22 }
  0x2e   : > { %682 = vrot.lane.b32.xlu0 %v1361_v3, %s1378_s22  ;;  %785 = vrot.lane.b32.xlu1 %v1359_v2, %s1379_s23 }
  0x32   : > { %787 = vrot.lane.b32.xlu0 %v1362_v4, %s1379_s23  ;;  %783 = vrot.lane.b32.xlu1 %v1361_v3, %s1379_s23 }
  0x36   : > { %886 = vrot.lane.b32.xlu0 %v1359_v2, %s1380_s24  ;;  %888 = vrot.lane.b32.xlu1 %v1362_v4, %s1380_s24 }
  0x3a   : > { %884 = vrot.lane.b32.xlu0 %v1361_v3, %s1380_s24  ;;  %987 = vrot.lane.b32.xlu1 %v1359_v2, %s1381_s25  ;;  %s170_s24 = scalar_lea.vmem %s1527_s3, %s1335_s14 }
  0x3e   : > { %989 = vrot.lane.b32.xlu0 %v1362_v4, %s1381_s25  ;;  %985 = vrot.lane.b32.xlu1 %v1361_v3, %s1381_s25 }
  0x42   : > { %1086 = vperm.xlu0 %1356, %v172_v5   ;;  %1093 = vperm.xlu1 %1357, %v172_v5  }
  0x46   : > { %1358 = vset.pattern.permute.xlu0 %v1382_v6 }
  0x84   : > { %v196_v7 = vpop.permute.xlu0 %195  ;;  %v194_v8 = vpop.permute.xlu1 %193 }
  0x85   : > { %v200_v12 = vsel %vm199_vm1, %v194_v8, %v196_v7 }
  0x88   : > { %v198_v9 = vpop.permute.xlu0 %197  ;;  %v382_v13 = vpop.permute.xlu1 %381 }
  0x89   : > { %1218 = vmatpush3.bf16.msra.mxu1 %v198_v9  ;;  %v201_v10 = vsel %vm199_vm1, %v196_v7, %v198_v9 }
  0x8a   : > { %209 = vmatprep.subr.bf16.mxu0 %v201_v10  ;;  %1223 = vmatprep.subr.bf16.mxu1 %v1371_v0 }
  0x8b   : > { %210 = vmatpush1.bf16.msra.mxu0 %v200_v12 }
  0x8c   : > { %1220 = vmatmul.mubr.msk.bf16.vlgmr.msra.gmra.mrb[0].mxu1 %vm205_vm2, %v1168_v11  ;;  %296 = vmatprep.subr.bf16.mxu0 %v1359_v2  ;;  %v384_v14 = vpop.permute.xlu0 %383  ;;  %v380_v16 = vpop.permute.xlu1 %379 }
  0x8d   : > { %1224 = vmatpush3.bf16.msra.mxu1 %v1362_v4  ;;  %1225 = vmatprep.mubr.msk.bf16.mxu1 %vm1372_vm0, %v1371_v0  ;;  %v387_v15 = vsel %vm385_vm3, %v382_v13, %v384_v14  ;;  %v386_v19 = vsel %vm385_vm3, %v380_v16, %v382_v13 }
  0x8e   : > { %1172 = vmatmul.mubr.msk.bf16.vlgmr.msra.gmra.mrb[0].mxu0 %vm205_vm2, %v1168_v11  ;;  %1229 = vmatprep.subr.bf16.mxu1 %v1371_v0 }
  0x8f   : > { %297 = vmatpush1.bf16.msra.mxu0 %v1361_v3  ;;  %328 = vmatprep.mubr.bf16.mxu0 %v1373_v1 }
  0x90   : > { %394 = vmatprep.subr.bf16.mxu0 %v387_v15  ;;  %v485_v18 = vpop.permute.xlu1 %484  ;;  %v483_v20 = vpop.permute.xlu0 %482 }
  0x91   : > { %v488_v21 = vsel %vm486_vm4, %v483_v20, %v485_v18 }
  0x94   : > { %v481_v22 = vpop.permute.xlu0 %480  ;;  %v584_v26 = vpop.permute.xlu1 %583 }
  0x95   : > { %v487_v25 = vsel %vm486_vm4, %v481_v22, %v483_v20 }
  0x98   : > { %1226 = vmatmul.mubr.msk.bf16.vlgmr.msra.gmra.mrb[0].mxu1 %vm205_vm2, %v177_v17  ;;  %v586_v24 = vpop.permute.xlu0 %585  ;;  %v582_v28 = vpop.permute.xlu1 %581 }
  0x99   : > { %1230 = vmatpush3.bf16.msra.mxu1 %v384_v14  ;;  %1231 = vmatprep.mubr.msk.bf16.mxu1 %vm1372_vm0, %v1371_v0  ;;  %v589_v27 = vsel %vm587_vm5, %v584_v26, %v586_v24  ;;  %v588_v31 = vsel %vm587_vm5, %v582_v28, %v584_v26 }
  0x9a   : > { %1174 = vmatmul.mubr.msk.bf16.vlgmr.msra.gmra.mrb[0].mxu0 %vm205_vm2, %v177_v17  ;;  %1235 = vmatprep.subr.bf16.mxu1 %v1371_v0 }
  0x9b   : > { %395 = vmatpush1.bf16.msra.mxu0 %v386_v19  ;;  %426 = vmatprep.mubr.bf16.mxu0 %v1373_v1 }
  0x9c   : > { %495 = vmatprep.subr.bf16.mxu0 %v488_v21  ;;  %v687_v30 = vpop.permute.xlu1 %686  ;;  %v685_v32 = vpop.permute.xlu0 %684 }
  0x9d   : > { %v690_v33 = vsel %vm688_vm6, %v685_v32, %v687_v30 }
  0xa0   : > { %v683_v34 = vpop.permute.xlu0 %682  ;;  %v786_v38 = vpop.permute.xlu1 %785 }
  0xa1   : > { %v689_v37 = vsel %vm688_vm6, %v683_v34, %v685_v32 }
  0xa4   : > { %1232 = vmatmul.mubr.msk.bf16.vlgmr.msra.gmra.mrb[0].mxu1 %vm205_vm2, %v1176_v23  ;;  %v788_v36 = vpop.permute.xlu0 %787  ;;  %v784_v40 = vpop.permute.xlu1 %783 }
  0xa5   : > { %1236 = vmatpush3.bf16.msra.mxu1 %v485_v18  ;;  %1237 = vmatprep.mubr.msk.bf16.mxu1 %vm1372_vm0, %v1371_v0  ;;  %v791_v39 = vsel %vm789_vm7, %v786_v38, %v788_v36  ;;  %v790_v43 = vsel %vm789_vm7, %v784_v40, %v786_v38 }
  0xa6   : > { %1177 = vmatmul.mubr.msk.bf16.vlgmr.msra.gmra.mrb[0].mxu0 %vm205_vm2, %v1176_v23  ;;  %1241 = vmatprep.subr.bf16.mxu1 %v1371_v0 }
  0xa7   : > { %496 = vmatpush1.bf16.msra.mxu0 %v487_v25  ;;  %527 = vmatprep.mubr.bf16.mxu0 %v1373_v1 }
  0xa8   : > { %596 = vmatprep.subr.bf16.mxu0 %v589_v27  ;;  %v889_v42 = vpop.permute.xlu1 %888  ;;  %v887_v44 = vpop.permute.xlu0 %886 }
  0xa9   : > { %v892_v45 = vsel %vm890_vm8, %v887_v44, %v889_v42 }
  0xac   : > { %v885_v46 = vpop.permute.xlu0 %884  ;;  %v988_v50 = vpop.permute.xlu1 %987 }
  0xad   : > { %v891_v49 = vsel %vm890_vm8, %v885_v46, %v887_v44 }
  0xb0   : > { %1238 = vmatmul.mubr.msk.bf16.vlgmr.msra.gmra.mrb[0].mxu1 %vm205_vm2, %v1179_v29  ;;  %v990_v48 = vpop.permute.xlu0 %989  ;;  %v986_v52 = vpop.permute.xlu1 %985 }
  0xb1   : > { %1242 = vmatpush3.bf16.msra.mxu1 %v586_v24  ;;  %1243 = vmatprep.mubr.msk.bf16.mxu1 %vm1372_vm0, %v1371_v0  ;;  %v993_v51 = vsel %vm991_vm9, %v988_v50, %v990_v48  ;;  %v992_v54 = vsel %vm991_vm9, %v986_v52, %v988_v50 }
  0xb2   : > { %1180 = vmatmul.mubr.msk.bf16.vlgmr.msra.gmra.mrb[0].mxu0 %vm205_vm2, %v1179_v29  ;;  %1247 = vmatprep.subr.bf16.mxu1 %v1371_v0 }
  0xb3   : > { %597 = vmatpush1.bf16.msra.mxu0 %v588_v31  ;;  %628 = vmatprep.mubr.bf16.mxu0 %v1373_v1 }
  0xb4   : > { %697 = vmatprep.subr.bf16.mxu0 %v690_v33 }
  0xbc   : > { %1244 = vmatmul.mubr.msk.bf16.vlgmr.msra.gmra.mrb[0].mxu1 %vm205_vm2, %v1182_v35 }
  0xbd   : > { %1248 = vmatpush3.bf16.msra.mxu1 %v687_v30  ;;  %1249 = vmatprep.mubr.msk.bf16.mxu1 %vm1372_vm0, %v1371_v0 }
  0xbe   : > { %1183 = vmatmul.mubr.msk.bf16.vlgmr.msra.gmra.mrb[0].mxu0 %vm205_vm2, %v1182_v35  ;;  %1253 = vmatprep.subr.bf16.mxu1 %v1371_v0 }
  0xbf   : > { %698 = vmatpush1.bf16.msra.mxu0 %v689_v37  ;;  %729 = vmatprep.mubr.bf16.mxu0 %v1373_v1 }
  0xc0   : > { %798 = vmatprep.subr.bf16.mxu0 %v791_v39 }
  0xc1   : > { %v1087_v56 = vpop.permute.xlu0 %1086  ;;  %v1094_v58 = vpop.permute.xlu1 %1093 }
  0xc8   : > { %1250 = vmatmul.mubr.msk.bf16.vlgmr.msra.gmra.mrb[0].mxu1 %vm205_vm2, %v1185_v41 }
  0xc9   : > { %1254 = vmatpush3.bf16.msra.mxu1 %v788_v36  ;;  %1255 = vmatprep.mubr.msk.bf16.mxu1 %vm1372_vm0, %v1371_v0 }
  0xca   : > { %1186 = vmatmul.mubr.msk.bf16.vlgmr.msra.gmra.mrb[0].mxu0 %vm205_vm2, %v1185_v41  ;;  %1259 = vmatprep.subr.bf16.mxu1 %v1371_v0 }
  0xcb   : > { %799 = vmatpush1.bf16.msra.mxu0 %v790_v43  ;;  %830 = vmatprep.mubr.bf16.mxu0 %v1373_v1 }
  0xcc   : > { %899 = vmatprep.subr.bf16.mxu0 %v892_v45 }
  0xd4   : > { %1256 = vmatmul.mubr.msk.bf16.vlgmr.msra.gmra.mrb[0].mxu1 %vm205_vm2, %v1188_v47 }
  0xd5   : > { %1260 = vmatpush3.bf16.msra.mxu1 %v889_v42  ;;  %1261 = vmatprep.mubr.msk.bf16.mxu1 %vm1372_vm0, %v1371_v0 }
  0xd6   : > { %1189 = vmatmul.mubr.msk.bf16.vlgmr.msra.gmra.mrb[0].mxu0 %vm205_vm2, %v1188_v47  ;;  %1265 = vmatprep.subr.bf16.mxu1 %v1371_v0 }
  0xd7   : > { %900 = vmatpush1.bf16.msra.mxu0 %v891_v49  ;;  %931 = vmatprep.mubr.bf16.mxu0 %v1373_v1 }
  0xd8   : > { %1000 = vmatprep.subr.bf16.mxu0 %v993_v51 }
  0xe0   : > { %1262 = vmatmul.mubr.msk.bf16.vlgmr.msra.gmra.mrb[0].mxu1 %vm205_vm2, %v1191_v53 }
  0xe1   : > { %1266 = vmatpush3.bf16.msra.mxu1 %v990_v48  ;;  %1267 = vmatprep.mubr.msk.bf16.mxu1 %vm1372_vm0, %v1371_v0 }
  0xe2   : > { %1192 = vmatmul.mubr.msk.bf16.vlgmr.msra.gmra.mrb[0].mxu0 %vm205_vm2, %v1191_v53 }
  0xe3   : > { %1001 = vmatpush1.bf16.msra.mxu0 %v992_v54  ;;  %1032 = vmatprep.mubr.bf16.mxu0 %v1373_v1 }
  0xec   : > { %1268 = vmatmul.mubr.msk.bf16.vlgmr.msra.gmra.mrb[0].mxu1 %vm205_vm2, %v1194_v55 }
  0xee   : > { %1195 = vmatmul.mubr.msk.bf16.vlgmr.msra.gmra.mrb[0].mxu0 %vm205_vm2, %v1194_v55 }
 0x1bf   : > { %v1075_v57 = vpop.f32.mrb[0].mxu1 }
 0x1c0   : > { %v1091_v59 = vmul.f32 %v1087_v56, %v1075_v57  ;;  %v1269_v60 = vpop.f32.mrb[1].mxu1 }
 0x1c1   : > { %v1034_v61 = vpop.f32.mrb[0].mxu0  ;;  %v1078_v62 = vpop.f32.mrb[2].mxu1 }
 0x1c2   : > { %v1089_v63 = vmul.f32 %v1087_v56, %v1034_v61  ;;  %v1098_v0 = vadd.f32 %v1094_v58, %v1091_v59  ;;  %v1036_v2 = vpop.f32.mrb[1].mxu0  ;;  %v1270_v3 = vpop.f32.mrb[3].mxu1 }
 0x1c3   : > { %v1090_v1 = vmul.f32 %v1087_v56, %v1036_v2  ;;  %v1038_v4 = vpop.f32.mrb[2].mxu0 }
 0x1c4   : > { %v1096_v5 = vadd.f32 %v1094_v58, %v1089_v63  ;;  %v1101_v6 = vmax.f32 %v1098_v0, 0.0  ;;  %v1039_v7 = vpop.f32.mrb[3].mxu0 }
 0x1c5   : > { %v1097_v8 = vadd.f32 %v1094_v58, %v1090_v1 }
 0x1c6   : > { %v1099_v9 = vmax.f32 %v1096_v5, 0.0  ;;  %1105 = vst.msk [vmem:[%s170_s24 + $0x10] sm:$0xff] %vm1104_vm10, %v1101_v6 }
 0x1c7   : > { %v1100_v10 = vmax.f32 %v1097_v8, 0.0 }
 0x1c8   : > { %1102 = vst [vmem:[%s170_s24] sm:$0xff] %v1099_v9 }
 0x1c9   : > { %1103 = vst [vmem:[%s170_s24 + $0x8] sm:$0xff] %v1100_v10 }
 0x1ca PF: > { %s13_s12 = sadd.s32 1, %s1369_s12  }
 0x1cb   : > { %p10_p4 = scmp.ge.s32.totalorder %s13_s12, 4  }
 0x1cd   :  { %12 = sbr.rel (!%p10_p4) target bundleno = 1 (0x1), region = 70 }

</bundles_post_ra>
